<compile_context>
chip_gen: v6e
topology: v6e:2x2x1
jax: 0.10.0
libtpu: 0.0.40
codegen_flags: <defaults>
</compile_context>

<pallas_src>
import functools

import jax
import jax.numpy as jnp
from jax.experimental import pallas as pl
from jax.experimental.pallas import tpu as pltpu

EPS = 1e-5


def _round_up(x, m):
    return ((x + m - 1) // m) * m


def prenorm_kernel(x_ref, w_ref, b_ref, o_ref, xn_ref, *, d_true):
    """Grid step (i, j): row tile i, output-column tile j.

    LayerNorm statistics run once per row tile (j == 0); the normalized
    activations are cached in VMEM scratch and reused for every j, so the
    steady state of the j sweep is just an MXU matmul + bias add.
    """

    @pl.when(pl.program_id(1) == 0)
    def _():
        x = x_ref[...].astype(jnp.float32)
        dpad = x.shape[-1]
        if d_true == dpad:
            mean = jnp.mean(x, axis=-1, keepdims=True)
            centered = x - mean
            var = jnp.mean(centered * centered, axis=-1, keepdims=True)
        else:
            # dim was padded up to a lane multiple.  Padded lanes of x are
            # already zero (jnp.pad in the wrapper), so the mean needs no
            # mask -- only the divisor changes.  `centered` is masked so the
            # padded lanes feed neither the variance nor the MXU.
            inv_d = 1.0 / float(d_true)
            lane = jax.lax.broadcasted_iota(jnp.int32, (1, dpad), 1)
            mask = (lane < d_true).astype(jnp.float32)
            mean = jnp.sum(x, axis=-1, keepdims=True) * inv_d
            centered = (x - mean) * mask
            var = jnp.sum(centered * centered, axis=-1, keepdims=True) * inv_d
        xn = centered * jax.lax.rsqrt(var + EPS)
        xn_ref[...] = xn.astype(xn_ref.dtype)

    out = jnp.dot(xn_ref[...], w_ref[...],
                  preferred_element_type=jnp.float32,
                  precision=jax.lax.Precision.HIGHEST)
    out = out + b_ref[...].astype(jnp.float32)
    o_ref[...] = out.astype(o_ref.dtype)


def prenorm_linear(x, gamma, beta, w, b, *, tm=256, matmul_dtype=None):
    """PreNorm(dim, Linear(dim, dim)) forward.  x: (batch, seq, dim).

    matmul_dtype: optionally cast the (gamma-folded) weights to e.g.
    jnp.bfloat16 for native-MXU throughput; stats/accumulation stay f32.
    """
    batch, seq, dim = x.shape
    m = batch * seq

    # ---- fold gamma/beta into the linear layer (exact identity) ----------
    # (xn * g + beta) @ W + b == xn @ (diag(g) W) + (beta @ W + b)
    w_f32 = w.astype(jnp.float32)
    w_dtype = matmul_dtype if matmul_dtype is not None else w.dtype
    w_eff = (gamma.astype(jnp.float32)[:, None] * w_f32).astype(w_dtype)
    b_eff = (jnp.dot(beta.astype(jnp.float32), w_f32,
                     precision=jax.lax.Precision.HIGHEST)
             + b.astype(jnp.float32)).reshape(1, dim)

    x_itemsize = jnp.dtype(x.dtype).itemsize
    w_itemsize = jnp.dtype(w_eff.dtype).itemsize
    sub = {4: 8, 2: 16, 1: 32}.get(x_itemsize, 8)        # sublane packing

    # Physical VMEM for this generation (64 MiB/TC on v7x, 128 MiB v5e/v6e).
    try:
        vmem_cap = int(pltpu.get_tpu_info().vmem_capacity_bytes)
    except Exception:  # conservative fallback if the query is unavailable
        vmem_cap = 64 * 1024 * 1024
    vmem_budget = int(vmem_cap * 0.85)                   # headroom for Mosaic

    dpad = max(128, _round_up(dim, 128))                 # lane-dense K axis

    tm = max(sub, min(_round_up(tm, sub), _round_up(m, sub)))

    def tile_bytes(tm_, tn_, w_bufs):
        return (2 * tm_ * dpad * x_itemsize              # x (double-buffered)
                + 2 * tm_ * tn_ * x_itemsize             # out (double-buffered)
                + tm_ * dpad * w_itemsize                # xn scratch
                + w_bufs * (dpad * tn_ + tn_) * w_itemsize)   # W + bias

    w_total_bytes = dpad * dpad * w_itemsize

    if tile_bytes(tm, dpad, 2) <= vmem_budget and w_total_bytes < (4 << 20):
        # Whole W resident; small enough that default double-buffering is
        # harmless.  Constant block index -> W fetched from HBM exactly once.
        tn, npad, w_buffers = dpad, dpad, 2
    elif tile_bytes(tm, dpad, 1) <= vmem_budget:
        # Whole W resident, single-buffered to halve its VMEM footprint
        # (the difference between fitting or not on v7x's 64 MiB VMEM).
        tn, npad, w_buffers = dpad, dpad, 1
    else:
        # Stream W in output-column tiles.  tn is a multiple of 256 so the
        # 2x256x256 MXU on v6e/v7x is filled; pad the output axis up rather
        # than degrading tn to 128 (only shrink if the tile set cannot fit).
        w_buffers = 2
        tn = 512 if dpad % 512 == 0 else 256
        while tn > 128 and tile_bytes(tm, tn, w_buffers) > vmem_budget:
            tn //= 2
        npad = _round_up(dpad, tn)
        # W HBM traffic scales as W_bytes * ceil(m / tm): raise the row tile
        # while the tile set still fits to amortize the re-streaming.
        while tm < min(1024, _round_up(m, sub)):
            tm2 = min(tm * 2, _round_up(m, sub))
            if tile_bytes(tm2, tn, w_buffers) <= vmem_budget:
                tm = tm2
            else:
                break

    # Megacore (v7x): give the parallel row axis at least 2 tiles when the
    # data allows it so both TensorCores get work.
    if pl.cdiv(m, tm) == 1 and m > sub:
        tm = max(sub, _round_up((m + 1) // 2, sub))
    mpad = _round_up(m, tm)

    needed = tile_bytes(tm, tn, w_buffers)
    vmem_limit = int(min(vmem_cap, max(needed + needed // 4, 16 * 1024 * 1024)))

    # ---- pad operands to the tiled shapes ---------------------------------
    x2 = x.reshape(m, dim)
    if mpad != m or dpad != dim:
        x2 = jnp.pad(x2, ((0, mpad - m), (0, dpad - dim)))
    if dpad != dim or npad != dim:
        w_eff = jnp.pad(w_eff, ((0, dpad - dim), (0, npad - dim)))
        b_eff = jnp.pad(b_eff, ((0, 0), (0, npad - dim)))

    # ---- BlockSpecs --------------------------------------------------------
    w_spec = pl.BlockSpec((dpad, tn), lambda i, j: (0, j))
    b_spec = pl.BlockSpec((1, tn), lambda i, j: (0, j))
    if w_buffers == 1:
        try:  # single-buffer the resident weight/bias tiles
            w_spec = pl.BlockSpec((dpad, tn), lambda i, j: (0, j),
                                  pipeline_mode=pl.Buffered(1))
            b_spec = pl.BlockSpec((1, tn), lambda i, j: (0, j),
                                  pipeline_mode=pl.Buffered(1))
        except TypeError:
            pass  # older JAX without pipeline_mode: default buffering

    grid = (mpad // tm, npad // tn)

    out = pl.pallas_call(
        functools.partial(prenorm_kernel, d_true=dim),
        out_shape=jax.ShapeDtypeStruct((mpad, npad), x.dtype),
        grid_spec=pltpu.PrefetchScalarGridSpec(
            num_scalar_prefetch=0,
            grid=grid,
            in_specs=[
                pl.BlockSpec((tm, dpad), lambda i, j: (i, 0)),   # x rows
                w_spec,                                          # folded W
                b_spec,                                          # folded bias
            ],
            out_specs=pl.BlockSpec((tm, tn), lambda i, j: (i, j)),
            scratch_shapes=[pltpu.VMEM((tm, dpad), w_eff.dtype)],  # xn cache
        ),
        compiler_params=pltpu.CompilerParams(
            # The j (output-column) axis reuses the xn scratch written at
            # j == 0 -> must stay "arbitrary"; the row axis is embarrassingly
            # parallel and shards across TensorCores on v7x.
            dimension_semantics=("parallel", "arbitrary"),
            vmem_limit_bytes=vmem_limit,
        ),
    )(x2, w_eff, b_eff)

    return out[:m, :dim].reshape(batch, seq, dim)


def _reference(x, gamma, beta, w, b):
    xf = x.astype(jnp.float32)
    mean = jnp.mean(xf, axis=-1, keepdims=True)
    var = jnp.mean((xf - mean) ** 2, axis=-1, keepdims=True)
    xn = (xf - mean) / jnp.sqrt(var + EPS)
    y = xn * gamma + beta
    out = jnp.dot(y, w, precision=jax.lax.Precision.HIGHEST) + b
    return out.astype(x.dtype)


if __name__ == "__main__":
    batch, seq, dim = 2, 8, 32
    key = jax.random.PRNGKey(0)
    kx, kg, kb, kw, kbias = jax.random.split(key, 5)

    x = jax.random.normal(kx, (batch, seq, dim), dtype=jnp.float32)

    # Deterministic synthetic parameters: nn.LayerNorm affine (perturbed so
    # gamma/beta actually matter), fn = Linear(dim, dim).
    gamma = jnp.ones((dim,), jnp.float32) + 0.01 * jax.random.normal(kg, (dim,))
    beta = 0.01 * jax.random.normal(kb, (dim,))
    w = jax.random.normal(kw, (dim, dim), jnp.float32) / jnp.sqrt(dim)
    b = 0.01 * jax.random.normal(kbias, (dim,))

    out = prenorm_linear(x, gamma, beta, w, b)
    jax.block_until_ready(out)

    ref = _reference(x, gamma, beta, w, b)
    assert out.shape == (batch, seq, dim)
    assert jnp.allclose(out, ref, atol=1e-4, rtol=1e-4), "mismatch vs reference"

    print("KERNEL_OK")
</pallas_src>

<mosaic_0001>
module attributes {stable_mosaic.version = 11 : i64} {
  func.func @prenorm_kernel(%arg0: i32, %arg1: i32, %arg2: memref<8x128xf32, #tpu.memory_space<vmem>>, %arg3: memref<128x128xf32, #tpu.memory_space<vmem>>, %arg4: memref<1x128xf32, #tpu.memory_space<vmem>>, %arg5: memref<8x128xf32, #tpu.memory_space<vmem>>, %arg6: memref<8x128xf32, #tpu.memory_space<vmem>>) attributes {dimension_semantics = [#tpu.dimension_semantics<parallel>, #tpu.dimension_semantics<arbitrary>], iteration_bounds = array<i64: 2, 1>, scalar_prefetch = 0 : i64, scratch_operands = 1 : i64, tpu.core_type = #tpu.core_type<tc>, window_params = [{transform_indices = @transform_0, window_bounds = array<i64: 8, 128>}, {transform_indices = @transform_1, window_bounds = array<i64: 128, 128>}, {transform_indices = @transform_2, window_bounds = array<i64: 1, 128>}, {transform_indices = @transform_3, window_bounds = array<i64: 8, 128>}]} {
    %c0_i32 = arith.constant 0 : i32
    %0 = arith.cmpi eq, %arg1, %c0_i32 : i32
    %1 = arith.extui %0 : i1 to i32
    %c0_i32_0 = arith.constant 0 : i32
    %2 = arith.cmpi ne, %1, %c0_i32_0 : i32
    scf.if %2 {
      %c0_8 = arith.constant 0 : index
      %c0_9 = arith.constant 0 : index
      %10 = vector.load %arg2[%c0_8, %c0_9] : memref<8x128xf32, #tpu.memory_space<vmem>>, vector<8x128xf32>
      %11 = tpu.iota {dimensions = array<i32: 1>} : vector<1x128xi32>
      %c32_i32 = arith.constant 32 : i32
      %12 = vector.broadcast %c32_i32 : i32 to vector<1x128xi32>
      %13 = arith.cmpi slt, %11, %12 : vector<1x128xi32>
      %14 = arith.extui %13 : vector<1x128xi1> to vector<1x128xi32>
      %15 = arith.sitofp %14 : vector<1x128xi32> to vector<1x128xf32>
      %cst_10 = arith.constant dense<0.000000e+00> : vector<8xf32>
      %16 = vector.multi_reduction <add>, %10, %cst_10 [1] : vector<8x128xf32> to vector<8xf32>
      %17 = vector.shape_cast %16 : vector<8xf32> to vector<8x1xf32>
      %cst_11 = arith.constant 3.125000e-02 : f32
      %18 = vector.broadcast %cst_11 : f32 to vector<8x1xf32>
      %19 = arith.mulf %17, %18 : vector<8x1xf32>
      %20 = vector.broadcast %19 : vector<8x1xf32> to vector<8x128xf32>
      %21 = arith.subf %10, %20 : vector<8x128xf32>
      %22 = vector.broadcast %15 : vector<1x128xf32> to vector<8x128xf32>
      %23 = arith.mulf %21, %22 : vector<8x128xf32>
      %24 = arith.mulf %23, %23 : vector<8x128xf32>
      %cst_12 = arith.constant dense<0.000000e+00> : vector<8xf32>
      %25 = vector.multi_reduction <add>, %24, %cst_12 [1] : vector<8x128xf32> to vector<8xf32>
      %26 = vector.shape_cast %25 : vector<8xf32> to vector<8x1xf32>
      %cst_13 = arith.constant 3.125000e-02 : f32
      %27 = vector.broadcast %cst_13 : f32 to vector<8x1xf32>
      %28 = arith.mulf %26, %27 : vector<8x1xf32>
      %cst_14 = arith.constant 9.99999974E-6 : f32
      %29 = vector.broadcast %cst_14 : f32 to vector<8x1xf32>
      %30 = arith.addf %28, %29 : vector<8x1xf32>
      %31 = math.rsqrt %30 : vector<8x1xf32>
      %32 = vector.broadcast %31 : vector<8x1xf32> to vector<8x128xf32>
      %33 = arith.mulf %23, %32 : vector<8x128xf32>
      %c0_15 = arith.constant 0 : index
      %c0_16 = arith.constant 0 : index
      %34 = vector.load %arg6[%c0_15, %c0_16] : memref<8x128xf32, #tpu.memory_space<vmem>>, vector<8x128xf32>
      tpu.vector_store %arg6[%c0_15, %c0_16], %33 {strides = array<i32>} : memref<8x128xf32, #tpu.memory_space<vmem>>, vector<8x128xf32>,
    } else {
    }
    %c0 = arith.constant 0 : index
    %c0_1 = arith.constant 0 : index
    %3 = vector.load %arg6[%c0, %c0_1] : memref<8x128xf32, #tpu.memory_space<vmem>>, vector<8x128xf32>
    %c0_2 = arith.constant 0 : index
    %c0_3 = arith.constant 0 : index
    %4 = vector.load %arg3[%c0_2, %c0_3] : memref<128x128xf32, #tpu.memory_space<vmem>>, vector<128x128xf32>
    %cst = arith.constant dense<0.000000e+00> : vector<8x128xf32>
    %5 = tpu.matmul %3, %4, %cst {dimension_numbers = #tpu.dot_dimension_numbers<[1], [0], [0], [1], [0, 0, 1, 1], [], []>, precision = #tpu.contract_precision<fp32>} : vector<8x128xf32>, vector<128x128xf32>, vector<8x128xf32> -> vector<8x128xf32>
    %c0_4 = arith.constant 0 : index
    %c0_5 = arith.constant 0 : index
    %6 = vector.load %arg4[%c0_4, %c0_5] : memref<1x128xf32, #tpu.memory_space<vmem>>, vector<1x128xf32>
    %7 = vector.broadcast %6 : vector<1x128xf32> to vector<8x128xf32>
    %8 = arith.addf %5, %7 : vector<8x128xf32>
    %c0_6 = arith.constant 0 : index
    %c0_7 = arith.constant 0 : index
    %9 = vector.load %arg5[%c0_6, %c0_7] : memref<8x128xf32, #tpu.memory_space<vmem>>, vector<8x128xf32>
    tpu.vector_store %arg5[%c0_6, %c0_7], %8 {strides = array<i32>} : memref<8x128xf32, #tpu.memory_space<vmem>>, vector<8x128xf32>,
    return
  }
  func.func @transform_0(%arg0: i32, %arg1: i32) -> (i32, i32) {
    %c0_i32 = arith.constant 0 : i32
    %c0_i32_0 = arith.constant 0 : i32
    return %arg0, %c0_i32 : i32, i32
  }
  func.func @transform_1(%arg0: i32, %arg1: i32) -> (i32, i32) {
    %c0_i32 = arith.constant 0 : i32
    %c0_i32_0 = arith.constant 0 : i32
    return %c0_i32, %arg1 : i32, i32
  }
  func.func @transform_2(%arg0: i32, %arg1: i32) -> (i32, i32) {
    %c0_i32 = arith.constant 0 : i32
    %c0_i32_0 = arith.constant 0 : i32
    return %c0_i32, %arg1 : i32, i32
  }
  func.func @transform_3(%arg0: i32, %arg1: i32) -> (i32, i32) {
    %c0_i32 = arith.constant 0 : i32
    return %arg0, %arg1 : i32, i32
  }
}

</mosaic_0001>

<bundles_post_ra>
// kernel: tpu_custom_call.1
= control target key start
LH: loop header
LB: loop body
LE: loop exit
PB: predicated region body
PF: predicated region fallthrough
CT: control target
= control target key end

     0   :  { %8 = vsyncpa [#allocation4], 0  ;;  %s2162_s0 = inlined_call_operand.hbm [shape: f32[16,128], index: 0, kind: input, shape index: {}]   ;;  %s2163_s1 = inlined_call_operand.hbm [shape: f32[128,128], index: 1, kind: input, shape index: {}]   ;;  %s2164_s2 = inlined_call_operand.vmem [shape: f32[1,128], index: 2, kind: input, shape index: {}]   ;;  %s2165_s3 = inlined_call_operand.hbm [shape: f32[16,128], index: 3, kind: output, shape index: {}]  }
   0x1   :  { %10 = vsyncpa [#allocation4 + $0x1], 0 }
   0x2   :  { %11 = vsyncpa [#allocation7], 0 }
   0x3   :  { %12 = vsyncpa [#allocation5], 0 }
   0x4   :  { %14 = vsyncpa [#allocation5 + $0x1], 0  ;;  %s1619_s12 = smov 0   ;;  %s1621_s13 = smov 0  }
   0x5   :  { %s1623_s14 = smov 0   ;;  %s1625_s15 = smov 0  }
   0x6   :  { %s1627_s16 = smov 0   ;;  %s1629_s17 = smov 0  }
   0x7 LB: > { %s1043_s18 = sadd.s32 4294967295, %s1590_s17   ;;  %s1044_s19 = sadd.s32 4294967294, %s1590_s17   ;;  %s1590_s17 = sphi %s1629_s17, %s20_s17   ;;  %s1586_s16 = sphi %s1627_s16, %s2183_s16   ;;  %s1582_s15 = sphi %s1625_s15, %s2182_s15   ;;  %s1578_s14 = sphi %s1623_s14, %s2181_s14   ;;  %s1574_s13 = sphi %s1621_s13, %s2180_s13   ;;  %s1570_s12 = sphi %s1619_s12, %s2179_s12  }
   0x8   : > { %p52_p0 = scmp.ne.s32.totalorder %s1574_s13, %s1570_s12  ;;  %p1653_p1 = scmp.eq.s32.totalorder %s1043_s18, 0 }
   0x9   : > { %p1657_p2 = scmp.eq.s32.totalorder %s1043_s18, 1  ;;  %p136_p3 = scmp.eq.s32.totalorder %s1044_s19, 1 }
   0xa   : > { %p1663_p4 = por %p1653_p1, %p52_p0  ;;  %p1045_p5 = scmp.ge.s32.totalorder %s1590_s17, 1 }
   0xb   : > { %p1668_p6 = por %p136_p3, %p52_p0  ;;  %p143_p7 = scmp.lt.s32.totalorder %s1590_s17, 3 }
   0xc   : > { %s2169_s22 = scalar_select %p1663_p4, 1, 0 }
   0xd   : > { %s2170_s23 = scalar_select %p1668_p6, 1, 0 }
   0xe   : > { %p1673_p8 = pnand %p1045_p5, %p143_p7  ;;  %s1592_s25 = smov [#allocation6]  }
   0xf   : > { %s157_s26 = sshll.u32 %s1592_s25, 4  ;;  %s32_s28 = sadd.s32 1, %s1586_s16  ;;  %s158_s26 = int_to_ptr.vmem [resolvable:$true] %s157_s26 }
  0x10   : > { %p1381_p9 = pneg %p1673_p8  ;;  %s1463_s29 = scalar_lea.vmem %s158_s26, 2048 }
  0x11   : > { %p1464_p13 = scmp.ne.s32.totalorder %s158_s26, %s1463_s29  ;;  %p1471_p5 = scmp.lt.s32.totalorder %s158_s26, %s158_s26 }
  0x12   : > { %p1682_p11 = pnand %p1381_p9, %p1653_p1  ;;  %p1472_p7 = scmp.lt.s32.totalorder %s1463_s29, %s1463_s29 }
  0x14   : > { %p1454_p12 = pneg %p1682_p11  ;;  %p1473_p6 = por %p1472_p7, %p1471_p5 }
  0x16   : > { %p1466_p0 = pnand %p1464_p13, %p1454_p12 }
  0x18   : > { %p1467_p3 = pneg %p1466_p0 }
  0x1a   : > { %p1474_p4 = pnand %p1473_p6, %p1467_p3 }
  0x1c   : > { %1477 = shalt.err (!%p1474_p4)
}
  0x1d   : > { %s1593_s30 = smov 128   ;;  %s1594_s4 = smov 8  }
  0x1e   : > { %1384 = dma.hbm_to_vmem [thread:$0]  (!%p1682_p11), %s2163_s1, 2048, %s158_s26, [#allocation7], %s1593_s30, %s1593_s30, %s1594_s4  }
  0x1f   : > { %p34_p6 = scmp.ge.s32.totalorder %s32_s28, 2  ;;  %s39_s7 = sadd.s32 1, %s1578_s14 }
  0x20   : > { %p46_p4 = scmp.ne.s32.totalorder %s1578_s14, %s1574_s13  ;;  %p47_p9 = scmp.eq.s32.totalorder %s1590_s17, 0 }
  0x21   : > { %s2185_s28 = smov (%p34_p6, %s32_s28), 0  ;;  %p1394_p0 = scmp.lt.s32.totalorder %s1590_s17, 2 }
  0x22   : > { %p1700_p12 = por %p47_p9, %p46_p4  ;;  %p1706_p13 = por %p1657_p2, %p46_p4 }
  0x23   : > { %s36_s10 = ssub.s32 %s1586_s16, %s2185_s28  ;;  %s177_s11 = sand.u32 1, %s1578_s14  }
  0x24   : > { %p37_p11 = scmp.eq.s32.totalorder %s36_s10, 0  ;;  %s1049_s18 = sshll.u32 %s177_s11, 3 }
  0x25   : > { %s1050_s25 = sshll.u32 %s1586_s16, 7  ;;  %s181_s30 = scalar_lea.vmem [#allocation3], %s1049_s18 }
  0x26   : > { %s1715_s19 = scalar_select %p37_p11, %s1578_s14, %s39_s7  }
  0x27   : > { %s186_s29 = scalar_lea.hbm %s2162_s0, %s1050_s25  ;;  %s188_s4 = sshll.u32 %s181_s30, 4  ;;  %s189_s4 = int_to_ptr.vmem [resolvable:$true] %s188_s4 }
  0x28   : > { %p1723_p2 = pnand %p1394_p0, %p1700_p12  ;;  %s178_s5 = scalar_lea.sflag [#allocation4], %s177_s11 }
  0x29   : > { %s1491_s6 = scalar_lea.vmem %s189_s4, 128  ;;  %s1595_s7 = smov [#allocation3]  }
  0x2a   : > { %p1480_p3 = pneg %p1723_p2  ;;  %p1492_p5 = scmp.ne.s32.totalorder %s189_s4, %s1491_s6 }
  0x2b   : > { %s1496_s10 = sshll.u32 %s1595_s7, 4  ;;  %s1497_s10 = int_to_ptr.vmem [resolvable:$false] %s1496_s10 }
  0x2c   : > { %p1494_p7 = pnand %p1492_p5, %p1480_p3  ;;  %s1498_s25 = scalar_lea.vmem %s1497_s10, 256 }
  0x2d   : > { %p1499_p4 = scmp.lt.s32.totalorder %s189_s4, %s1497_s10  ;;  %p1500_p9 = scmp.lt.s32.totalorder %s1498_s25, %s1491_s6 }
  0x2e   : > { %p1495_p6 = pneg %p1494_p7 }
  0x2f   : > { %p1501_p11 = por %p1500_p9, %p1499_p4 }
  0x31   : > { %p1502_p10 = pnand %p1501_p11, %p1495_p6 }
  0x33   : > { %1505 = shalt.err (!%p1502_p10)
}
  0x34   : > { %1388 = dma.hbm_to_vmem [thread:$0]  (!%p1723_p2), %s186_s29, 128, %s189_s4, %s178_s5  }
  0x35   : > { %197 = sbr.rel (%p1673_p8) target bundleno = 652 (0x28c), region = 32  ;;  %s1734_s8 = sand.u32 (!%p1673_p8), 1, %s1574_s13  }
  0x36   : > { %s1052_s11 = sshll.u32 (!%p1673_p8), %s1734_s8, 3  ;;  %s200_s18 = scalar_lea.sflag (!%p1673_p8), [#allocation4], %s1734_s8 }
  0x37   : > { %s203_s26 = scalar_lea.vmem (!%p1673_p8), [#allocation3], %s1052_s11  ;;  %p2176_p12 = scmp.ne.s32.totalorder (!%p1673_p8), %s2169_s22, 0 }
  0x3a   : > { %1557 = dma.done.wait (%p2176_p12), %s200_s18, 128  }
  0x3b   : > { %1559 = vsyncadd (%p2176_p12), %s200_s18, 4294967168 }
  0x3c   : > { %1561 = dma.done.wait (%p1653_p1), [#allocation7], 2048  }
  0x3d   : > { %1563 = vsyncadd (%p1653_p1), [#allocation7], 4294965248  ;;  %v1748_v0 = vld [vmem:[%s203_s26] sm:$0xff]  ;;  %v1596_v1 = vmov 0.0   ;;  %v273_v4 = vld [vmem:[#allocation6 + $0x68] sm:$0xff]  ;;  %v241_v32 = vlaneseq  ;;  %vm1597_vm1 = vmmov 0  }
  0x3e   : > { %246 = vadd.xlane.f32.xlu0 %v1748_v0  ;;  %1198 = vmatprep.subr.mxu1 %v1596_v1  ;;  %v275_v2 = vld [vmem:[#allocation6 + $0x78] sm:$0xff]  ;;  %v274_v3 = vld [vmem:[#allocation6 + $0x70] sm:$0xff]  ;;  %v1757_v7 = vand.u32 4294901760, %v273_v4  ;;  %v272_v8 = vld [vmem:[#allocation6 + $0x60] sm:$0xff]  ;;  %s1058_s24 = sshll.u32 %s1582_s15, 7  ;;  %s232_s27 = scalar_lea.vmem [#allocation8], %s1052_s11 }
  0x3f   : > { %1163 = vmatprep.subr.mxu0 %v1596_v1  ;;  %v1753_v5 = vand.u32 4294901760, %v275_v2  ;;  %v1755_v6 = vand.u32 4294901760, %v274_v3  ;;  %v271_v9 = vld [vmem:[#allocation6 + $0x58] sm:$0xff]  ;;  %v1759_v10 = vand.u32 4294901760, %v272_v8  ;;  %v242_v33 = vand.u32 127, %v241_v32  ;;  %v270_v40 = vld [vmem:[#allocation6 + $0x50] sm:$0xff]  ;;  %1230 = vmatprep.mubr.msk.f32.mxu1 %vm1597_vm1, %v1596_v1  ;;  %s938_s21 = scalar_lea.hbm %s2165_s3, %s1058_s24 }
  0x40   : > { %v1761_v11 = vand.u32 4294901760, %v271_v9  ;;  %v1770_v14 = vsub.f32 %v273_v4, %v1757_v7  ;;  %v1819_v41 = vand.u32 4294901760, %v270_v40  ;;  %v269_v42 = vld [vmem:[#allocation6 + $0x48] sm:$0xff]  ;;  %v268_v45 = vld [vmem:[#allocation6 + $0x40] sm:$0xff]  ;;  %v267_v49 = vld [vmem:[#allocation6 + $0x38] sm:$0xff]  ;;  %1195 = vmatprep.mubr.msk.f32.mxu0 %vm1597_vm1, %v1596_v1  ;;  %s940_s29 = sshll.u32 %s232_s27, 4  ;;  %s941_s29 = int_to_ptr.vmem [resolvable:$true] %s940_s29 }
  0x41   : > { %v1764_v12 = vsub.f32 %v275_v2, %v1753_v5  ;;  %v1767_v13 = vsub.f32 %v274_v3, %v1755_v6  ;;  %1164 = vmatpush3.msra.mxu0 %v1753_v5  ;;  %v1774_v15 = vsub.f32 %v272_v8, %v1759_v10  ;;  %vm243_vm0 = vcmp.lt.s32.totalorder %v242_v33, 32  ;;  %v266_v54 = vld [vmem:[#allocation6 + $0x30] sm:$0xff]  ;;  %v265_v60 = vld [vmem:[#allocation6 + $0x28] sm:$0xff]  ;;  %v264_v3 = vld [vmem:[#allocation6 + $0x20] sm:$0xff]  ;;  %s926_s5 = scalar_lea.sflag [#allocation5], %s1734_s8  ;;  %s1506_s6 = scalar_lea.vmem %s941_s29, 128 }
  0x42   : > { %v1777_v16 = vsub.f32 %v271_v9, %v1761_v11  ;;  %1165 = vmatprep.subr.mxu0 %v1596_v1  ;;  %v391_v19 = vand.u32 4294901760, %v1770_v14  ;;  %v1055_v36 = vsel %vm243_vm0, 1.0, %v1596_v1  ;;  %v1822_v43 = vsub.f32 %v270_v40, %v1819_v41  ;;  %p1507_p1 = scmp.ne.s32.totalorder %s941_s29, %s1506_s6  ;;  %s1598_s7 = smov [#allocation8]  }
  0x43   : > { %v377_v17 = vand.u32 4294901760, %v1764_v12  ;;  %v384_v18 = vand.u32 4294901760, %v1767_v13  ;;  %1166 = vmatpush3.msra.mxu0 %v1755_v6  ;;  %v398_v20 = vand.u32 4294901760, %v1774_v15  ;;  %v1824_v44 = vand.u32 4294901760, %v269_v42  ;;  %s1510_s15 = sshll.u32 %s1598_s7, 4  ;;  %s1511_s15 = int_to_ptr.vmem [resolvable:$false] %s1510_s15 }
  0x44   : > { %1167 = vmatprep.subr.mxu0 %v1596_v1  ;;  %v392_v23 = vsub.f32 %v1770_v14, %v391_v19  ;;  %v405_v24 = vand.u32 4294901760, %v1777_v16  ;;  %v412_v46 = vand.u32 4294901760, %v1822_v43  ;;  %v1832_v48 = vand.u32 4294901760, %v268_v45  ;;  %p1508_p8 = pnand %p1507_p1, %p1706_p13  ;;  %s1512_s10 = scalar_lea.vmem %s1511_s15, 256 }
  0x45   : > { %v378_v21 = vsub.f32 %v1764_v12, %v377_v17  ;;  %v385_v22 = vsub.f32 %v1767_v13, %v384_v18  ;;  %1168 = vmatpush3.msra.mxu0 %v1757_v7  ;;  %v399_v27 = vsub.f32 %v1774_v15, %v398_v20  ;;  %v1830_v47 = vsub.f32 %v269_v42, %v1824_v44  ;;  %p1513_p0 = scmp.lt.s32.totalorder %s941_s29, %s1511_s15  ;;  %p1514_p2 = scmp.lt.s32.totalorder %s1512_s10, %s1506_s6 }
  0x46   : > { %1169 = vmatprep.subr.mxu0 %v1596_v1  ;;  %v393_v28 = vand.u32 4294901760, %v392_v23  ;;  %v406_v29 = vsub.f32 %v1777_v16, %v405_v24  ;;  %v413_v50 = vsub.f32 %v1822_v43, %v412_v46  ;;  %v1841_v52 = vsub.f32 %v268_v45, %v1832_v48  ;;  %v263_v23 = vld [vmem:[#allocation6 + $0x18] sm:$0xff]  ;;  %p1509_p10 = pneg %p1508_p8 }
  0x47   : > { %v379_v25 = vand.u32 4294901760, %v378_v21  ;;  %v386_v26 = vand.u32 4294901760, %v385_v22  ;;  %1170 = vmatpush3.msra.mxu0 %v1759_v10  ;;  %v400_v30 = vand.u32 4294901760, %v399_v27  ;;  %v419_v51 = vand.u32 4294901760, %v1830_v47  ;;  %p1515_p3 = por %p1514_p2, %p1513_p0 }
  0x48   : > { %1171 = vmatprep.subr.mxu0 %v1596_v1  ;;  %v407_v31 = vand.u32 4294901760, %v406_v29  ;;  %v1843_v53 = vand.u32 4294901760, %v267_v49  ;;  %v414_v55 = vand.u32 4294901760, %v413_v50  ;;  %v426_v57 = vand.u32 4294901760, %v1841_v52  ;;  %v262_v29 = vld [vmem:[#allocation6 + $0x10] sm:$0xff] }
  0x49   : > { %1199 = vmatpush3.msra.mxu1 %v379_v25  ;;  %1172 = vmatpush3.msra.mxu0 %v1761_v11  ;;  %v420_v56 = vsub.f32 %v1830_v47, %v419_v51  ;;  %v1855_v59 = vand.u32 4294901760, %v266_v54  ;;  %v1875_v21 = vand.u32 4294901760, %v264_v3  ;;  %v1892_v33 = vand.u32 4294901760, %v262_v29  ;;  %p1516_p5 = pnand %p1515_p3, %p1509_p10 }
  0x4a   : > { %1200 = vmatprep.subr.mxu1 %v1596_v1  ;;  %1173 = vmatprep.subr.mxu0 %v1596_v1  ;;  %v1852_v58 = vsub.f32 %v267_v49, %v1843_v53  ;;  %v427_v62 = vsub.f32 %v1841_v52, %v426_v57 }
  0x4b   : > { %1201 = vmatpush3.msra.mxu1 %v386_v26  ;;  %1174 = vmatpush3.msra.mxu0 %v1819_v41  ;;  %v421_v61 = vand.u32 4294901760, %v420_v56  ;;  %v1866_v2 = vsub.f32 %v266_v54, %v1855_v59  ;;  %v1883_v27 = vsub.f32 %v264_v3, %v1875_v21  ;;  %v1909_v42 = vsub.f32 %v262_v29, %v1892_v33 }
  0x4c   : > { %1202 = vmatprep.subr.mxu1 %v1596_v1  ;;  %1175 = vmatprep.subr.mxu0 %v1596_v1  ;;  %v433_v63 = vand.u32 4294901760, %v1852_v58  ;;  %v428_v4 = vand.u32 4294901760, %v427_v62 }
  0x4d   : > { %1203 = vmatpush3.msra.mxu1 %v393_v28  ;;  %1176 = vmatpush3.msra.mxu0 %v1824_v44  ;;  %v440_v22 = vand.u32 4294901760, %v1866_v2  ;;  %v1885_v28 = vand.u32 4294901760, %v263_v23  ;;  %v468_v56 = vand.u32 4294901760, %v1909_v42 }
  0x4e   : > { %1204 = vmatprep.subr.mxu1 %v1596_v1  ;;  %1177 = vmatprep.subr.mxu0 %v1596_v1  ;;  %v434_v8 = vsub.f32 %v1852_v58, %v433_v63 }
  0x4f   : > { %1205 = vmatpush3.msra.mxu1 %v400_v30  ;;  %1178 = vmatpush3.msra.mxu0 %v1832_v48  ;;  %v261_v30 = vld [vmem:[#allocation6 + $0x8] sm:$0xff]  ;;  %v441_v32 = vsub.f32 %v1866_v2, %v440_v22 }
  0x50   : > { %1206 = vmatprep.subr.mxu1 %v1596_v1  ;;  %1179 = vmatprep.subr.mxu0 %v1596_v1  ;;  %v435_v25 = vand.u32 4294901760, %v434_v8 }
  0x51   : > { %1207 = vmatpush3.msra.mxu1 %v407_v31  ;;  %1180 = vmatpush3.msra.mxu0 %v1843_v53  ;;  %v260_v31 = vld [vmem:[#allocation6] sm:$0xff]  ;;  %v442_v40 = vand.u32 4294901760, %v441_v32 }
  0x52   : > { %1208 = vmatprep.subr.mxu1 %v1596_v1  ;;  %1181 = vmatprep.subr.mxu0 %v1596_v1 }
  0x53   : > { %1209 = vmatpush3.msra.mxu1 %v414_v55  ;;  %1182 = vmatpush3.msra.mxu0 %v1855_v59 }
  0x54   : > { %1210 = vmatprep.subr.mxu1 %v1596_v1  ;;  %1183 = vmatprep.subr.mxu0 %v1596_v1 }
  0x55   : > { %1211 = vmatpush3.msra.mxu1 %v421_v61 }
  0x56   : > { %1212 = vmatprep.subr.mxu1 %v1596_v1 }
  0x57   : > { %1213 = vmatpush3.msra.mxu1 %v428_v4  ;;  %v469_v4 = vsub.f32 %v1909_v42, %v468_v56 }
  0x58   : > { %1214 = vmatprep.subr.mxu1 %v1596_v1 }
  0x59   : > { %1215 = vmatpush3.msra.mxu1 %v435_v25  ;;  %v470_v25 = vand.u32 4294901760, %v469_v4 }
  0x5a   : > { %1216 = vmatprep.subr.mxu1 %v1596_v1 }
  0x5b   : > { %1217 = vmatpush3.msra.mxu1 %v442_v40 }
  0x5c   : > { %1218 = vmatprep.subr.mxu1 %v1596_v1 }
  0xc7   : > { %v247_v34 = vpop.xlane.xlu0 %246 }
  0xc8   : > { %v248_v35 = vmul.f32 0.03125, %v247_v34  ;;  %v1894_v34 = vand.u32 4294901760, %v261_v30 }
  0xca   : > { %v249_v37 = vsub.f32 %v1748_v0, %v248_v35  ;;  %v1862_v0 = vand.u32 4294901760, %v265_v60  ;;  %v1897_v35 = vand.u32 4294901760, %v260_v31  ;;  %v1912_v45 = vsub.f32 %v261_v30, %v1894_v34 }
  0xcc   : > { %v1815_v38 = vmul.f32 %v1055_v36, %v249_v37  ;;  %v1873_v9 = vsub.f32 %v265_v60, %v1862_v0  ;;  %1184 = vmatpush3.msra.mxu0 %v1862_v0  ;;  %v454_v37 = vand.u32 4294901760, %v1883_v27  ;;  %v1915_v49 = vsub.f32 %v260_v31, %v1897_v35 }
  0xcd   : > { %1185 = vmatprep.subr.mxu0 %v1596_v1  ;;  %v475_v60 = vand.u32 4294901760, %v1912_v45 }
  0xce   : > { %v251_v39 = vmul.f32 %v1815_v38, %v1815_v38  ;;  %v447_v26 = vand.u32 4294901760, %v1873_v9  ;;  %1186 = vmatpush3.msra.mxu0 %v1875_v21  ;;  %v455_v54 = vsub.f32 %v1883_v27, %v454_v37  ;;  %v482_v61 = vand.u32 4294901760, %v1915_v49 }
  0xcf   : > { %1187 = vmatprep.subr.mxu0 %v1596_v1  ;;  %v476_v8 = vsub.f32 %v1912_v45, %v475_v60 }
  0xd0   : > { %252 = vadd.xlane.f32.xlu0 %v251_v39  ;;  %v448_v36 = vsub.f32 %v1873_v9, %v447_v26  ;;  %v1904_v39 = vsub.f32 %v263_v23, %v1885_v28  ;;  %1188 = vmatpush3.msra.mxu0 %v1885_v28  ;;  %v456_v62 = vand.u32 4294901760, %v455_v54  ;;  %v483_v29 = vsub.f32 %v1915_v49, %v482_v61 }
  0xd1   : > { %1189 = vmatprep.subr.mxu0 %v1596_v1  ;;  %v477_v30 = vand.u32 4294901760, %v476_v8 }
  0xd2   : > { %v449_v50 = vand.u32 4294901760, %v448_v36  ;;  %v461_v55 = vand.u32 4294901760, %v1904_v39  ;;  %1190 = vmatpush3.msra.mxu0 %v1892_v33  ;;  %v484_v31 = vand.u32 4294901760, %v483_v29 }
  0xd3   : > { %1191 = vmatprep.subr.mxu0 %v1596_v1 }
  0xd4   : > { %v462_v3 = vsub.f32 %v1904_v39, %v461_v55  ;;  %1219 = vmatpush3.msra.mxu1 %v449_v50  ;;  %1192 = vmatpush3.msra.mxu0 %v1894_v34 }
  0xd5   : > { %1220 = vmatprep.subr.mxu1 %v1596_v1  ;;  %1193 = vmatprep.subr.mxu0 %v1596_v1 }
  0xd6   : > { %v463_v23 = vand.u32 4294901760, %v462_v3  ;;  %1221 = vmatpush3.msra.mxu1 %v456_v62  ;;  %1194 = vmatpush3.msra.mxu0 %v1897_v35 }
  0xd7   : > { %1222 = vmatprep.subr.mxu1 %v1596_v1  ;;  %1233 = vmatprep.subr.mxu0 %v1596_v1 }
  0xd8   : > { %1223 = vmatpush3.msra.mxu1 %v463_v23 }
  0xd9   : > { %1224 = vmatprep.subr.mxu1 %v1596_v1 }
  0xda   : > { %1225 = vmatpush3.msra.mxu1 %v470_v25 }
  0xdb   : > { %1226 = vmatprep.subr.mxu1 %v1596_v1 }
  0xdc   : > { %1227 = vmatpush3.msra.mxu1 %v477_v30 }
  0xdd   : > { %1228 = vmatprep.subr.mxu1 %v1596_v1 }
  0xde   : > { %1229 = vmatpush3.msra.mxu1 %v484_v31 }
  0xdf   : > { %1268 = vmatprep.subr.mxu1 %v1596_v1 }
 0x159   : > { %v253_v32 = vpop.xlane.xlu0 %252 }
 0x15a   : > { %v254_v36 = vmul.f32 0.03125, %v253_v32 }
 0x15c   : > { %v255_v40 = vadd.f32 1e-05, %v254_v36 }
 0x15e   : > { %1450 = vrsqrt.f32 %v255_v40 }
 0x16b   : > { %v1451_v50 = vpop.eup %1450 }
 0x16c   : > { %v257_v54 = vmul.f32 %v1451_v50, %v1815_v38 }
 0x16e   : > { %v1956_v62 = vand.u32 4294901760, %v257_v54 }
 0x170   : > { %1231 = vmatmul.mubr.f32.vlgmr.msra.gmra.mxu1 %v1956_v62  ;;  %v1960_v3 = vsub.f32 %v257_v54, %v1956_v62 }
 0x171   : > { %1269 = vmatpush3.msra.mxu1 %v1753_v5  ;;  %1300 = vmatprep.mubr.msk.f32.mxu1 %vm1597_vm1, %v1596_v1 }
 0x172   : > { %1270 = vmatprep.subr.mxu1 %v1596_v1  ;;  %v366_v4 = vand.u32 4294901760, %v1960_v3 }
 0x173   : > { %1271 = vmatpush3.msra.mxu1 %v1755_v6 }
 0x174   : > { %1272 = vmatprep.subr.mxu1 %v1596_v1  ;;  %v367_v38 = vsub.f32 %v1960_v3, %v366_v4 }
 0x175   : > { %1273 = vmatpush3.msra.mxu1 %v1757_v7 }
 0x176   : > { %1274 = vmatprep.subr.mxu1 %v1596_v1  ;;  %v368_v8 = vand.u32 4294901760, %v367_v38 }
 0x177   : > { %1275 = vmatpush3.msra.mxu1 %v1759_v10 }
 0x178   : > { %1276 = vmatprep.subr.mxu1 %v1596_v1  ;;  %1196 = vmatmul.mubr.f32.vlgmr.msra.gmra.mxu0 %v368_v8 }
 0x179   : > { %1234 = vmatpush3.msra.mxu0 %v1764_v12  ;;  %1277 = vmatpush3.msra.mxu1 %v1761_v11 }
 0x17a   : > { %1235 = vmatprep.subr.mxu0 %v1596_v1  ;;  %1278 = vmatprep.subr.mxu1 %v1596_v1 }
 0x17b   : > { %1236 = vmatpush3.msra.mxu0 %v1767_v13  ;;  %1279 = vmatpush3.msra.mxu1 %v1819_v41 }
 0x17c   : > { %1237 = vmatprep.subr.mxu0 %v1596_v1  ;;  %1280 = vmatprep.subr.mxu1 %v1596_v1 }
 0x17d   : > { %1238 = vmatpush3.msra.mxu0 %v1770_v14  ;;  %1281 = vmatpush3.msra.mxu1 %v1824_v44 }
 0x17e   : > { %1239 = vmatprep.subr.mxu0 %v1596_v1  ;;  %1282 = vmatprep.subr.mxu1 %v1596_v1 }
 0x17f   : > { %1240 = vmatpush3.msra.mxu0 %v1774_v15  ;;  %1283 = vmatpush3.msra.mxu1 %v1832_v48  ;;  %v1056_v15 = vld [vmem:[%s2164_s2] ss:$0 sm:$0xff] }
 0x180   : > { %1241 = vmatprep.subr.mxu0 %v1596_v1  ;;  %1284 = vmatprep.subr.mxu1 %v1596_v1 }
 0x181   : > { %1242 = vmatpush3.msra.mxu0 %v1777_v16  ;;  %1285 = vmatpush3.msra.mxu1 %v1843_v53 }
 0x182   : > { %1243 = vmatprep.subr.mxu0 %v1596_v1  ;;  %1286 = vmatprep.subr.mxu1 %v1596_v1 }
 0x183   : > { %1244 = vmatpush3.msra.mxu0 %v1822_v43  ;;  %1287 = vmatpush3.msra.mxu1 %v1855_v59 }
 0x184   : > { %1245 = vmatprep.subr.mxu0 %v1596_v1  ;;  %1288 = vmatprep.subr.mxu1 %v1596_v1 }
 0x185   : > { %1246 = vmatpush3.msra.mxu0 %v1830_v47  ;;  %1289 = vmatpush3.msra.mxu1 %v1862_v0 }
 0x186   : > { %1247 = vmatprep.subr.mxu0 %v1596_v1  ;;  %1290 = vmatprep.subr.mxu1 %v1596_v1 }
 0x187   : > { %1248 = vmatpush3.msra.mxu0 %v1841_v52  ;;  %1291 = vmatpush3.msra.mxu1 %v1875_v21 }
 0x188   : > { %1249 = vmatprep.subr.mxu0 %v1596_v1  ;;  %1292 = vmatprep.subr.mxu1 %v1596_v1 }
 0x189   : > { %1250 = vmatpush3.msra.mxu0 %v1852_v58  ;;  %1293 = vmatpush3.msra.mxu1 %v1885_v28 }
 0x18a   : > { %1251 = vmatprep.subr.mxu0 %v1596_v1  ;;  %1294 = vmatprep.subr.mxu1 %v1596_v1 }
 0x18b   : > { %1252 = vmatpush3.msra.mxu0 %v1866_v2  ;;  %1295 = vmatpush3.msra.mxu1 %v1892_v33 }
 0x18c   : > { %1253 = vmatprep.subr.mxu0 %v1596_v1  ;;  %1296 = vmatprep.subr.mxu1 %v1596_v1 }
 0x18d   : > { %1254 = vmatpush3.msra.mxu0 %v1873_v9  ;;  %1297 = vmatpush3.msra.mxu1 %v1894_v34 }
 0x18e   : > { %1255 = vmatprep.subr.mxu0 %v1596_v1  ;;  %1298 = vmatprep.subr.mxu1 %v1596_v1 }
 0x18f   : > { %1256 = vmatpush3.msra.mxu0 %v1883_v27  ;;  %1299 = vmatpush3.msra.mxu1 %v1897_v35 }
 0x190   : > { %1257 = vmatprep.subr.mxu0 %v1596_v1  ;;  %1301 = vmatmul.mubr.f32.vlgmr.msra.gmra.mxu1 %v366_v4 }
 0x191   : > { %1338 = vmatprep.subr.mxu1 %v1596_v1  ;;  %1258 = vmatpush3.msra.mxu0 %v1904_v39 }
 0x192   : > { %1339 = vmatpush3.msra.mxu1 %v1753_v5  ;;  %1259 = vmatprep.subr.mxu0 %v1596_v1 }
 0x193   : > { %1340 = vmatprep.subr.mxu1 %v1596_v1  ;;  %1260 = vmatpush3.msra.mxu0 %v1909_v42 }
 0x194   : > { %1341 = vmatpush3.msra.mxu1 %v1755_v6  ;;  %1261 = vmatprep.subr.mxu0 %v1596_v1 }
 0x195   : > { %1342 = vmatprep.subr.mxu1 %v1596_v1  ;;  %1262 = vmatpush3.msra.mxu0 %v1912_v45 }
 0x196   : > { %1343 = vmatpush3.msra.mxu1 %v1757_v7  ;;  %1263 = vmatprep.subr.mxu0 %v1596_v1 }
 0x197   : > { %1344 = vmatprep.subr.mxu1 %v1596_v1  ;;  %1264 = vmatpush3.msra.mxu0 %v1915_v49 }
 0x198   : > { %1265 = vmatprep.mubr.msk.f32.mxu0 %vm1597_vm1, %v1596_v1  ;;  %1345 = vmatpush3.msra.mxu1 %v1759_v10 }
 0x199   : > { %1266 = vmatmul.mubr.f32.vlgmr.msra.gmra.mxu0 %v1960_v3  ;;  %1303 = vmatprep.subr.mxu0 %v1596_v1 }
 0x19a   : > { %1346 = vmatprep.subr.mxu1 %v1596_v1  ;;  %1304 = vmatpush3.msra.mxu0 %v377_v17 }
 0x19b   : > { %1347 = vmatpush3.msra.mxu1 %v1761_v11  ;;  %1305 = vmatprep.subr.mxu0 %v1596_v1 }
 0x19c   : > { %1348 = vmatprep.subr.mxu1 %v1596_v1  ;;  %1306 = vmatpush3.msra.mxu0 %v384_v18 }
 0x19d   : > { %1349 = vmatpush3.msra.mxu1 %v1819_v41  ;;  %1307 = vmatprep.subr.mxu0 %v1596_v1 }
 0x19e   : > { %1350 = vmatprep.subr.mxu1 %v1596_v1  ;;  %1308 = vmatpush3.msra.mxu0 %v391_v19 }
 0x19f   : > { %1351 = vmatpush3.msra.mxu1 %v1824_v44  ;;  %1309 = vmatprep.subr.mxu0 %v1596_v1 }
 0x1a0   : > { %1352 = vmatprep.subr.mxu1 %v1596_v1  ;;  %1310 = vmatpush3.msra.mxu0 %v398_v20 }
 0x1a1   : > { %1353 = vmatpush3.msra.mxu1 %v1832_v48  ;;  %1311 = vmatprep.subr.mxu0 %v1596_v1 }
 0x1a2   : > { %1354 = vmatprep.subr.mxu1 %v1596_v1  ;;  %1312 = vmatpush3.msra.mxu0 %v405_v24 }
 0x1a3   : > { %1355 = vmatpush3.msra.mxu1 %v1843_v53  ;;  %1313 = vmatprep.subr.mxu0 %v1596_v1 }
 0x1a4   : > { %1356 = vmatprep.subr.mxu1 %v1596_v1  ;;  %1314 = vmatpush3.msra.mxu0 %v412_v46 }
 0x1a5   : > { %1357 = vmatpush3.msra.mxu1 %v1855_v59  ;;  %1315 = vmatprep.subr.mxu0 %v1596_v1 }
 0x1a6   : > { %1358 = vmatprep.subr.mxu1 %v1596_v1  ;;  %1316 = vmatpush3.msra.mxu0 %v419_v51 }
 0x1a7   : > { %1359 = vmatpush3.msra.mxu1 %v1862_v0  ;;  %1317 = vmatprep.subr.mxu0 %v1596_v1 }
 0x1a8   : > { %1360 = vmatprep.subr.mxu1 %v1596_v1  ;;  %1318 = vmatpush3.msra.mxu0 %v426_v57 }
 0x1a9   : > { %1361 = vmatpush3.msra.mxu1 %v1875_v21  ;;  %1319 = vmatprep.subr.mxu0 %v1596_v1 }
 0x1aa   : > { %1362 = vmatprep.subr.mxu1 %v1596_v1  ;;  %1320 = vmatpush3.msra.mxu0 %v433_v63 }
 0x1ab   : > { %1363 = vmatpush3.msra.mxu1 %v1885_v28  ;;  %1321 = vmatprep.subr.mxu0 %v1596_v1 }
 0x1ac   : > { %1364 = vmatprep.subr.mxu1 %v1596_v1  ;;  %1322 = vmatpush3.msra.mxu0 %v440_v22 }
 0x1ad   : > { %1365 = vmatpush3.msra.mxu1 %v1892_v33  ;;  %1323 = vmatprep.subr.mxu0 %v1596_v1 }
 0x1ae   : > { %1366 = vmatprep.subr.mxu1 %v1596_v1  ;;  %1324 = vmatpush3.msra.mxu0 %v447_v26 }
 0x1af   : > { %1367 = vmatpush3.msra.mxu1 %v1894_v34  ;;  %1325 = vmatprep.subr.mxu0 %v1596_v1 }
 0x1b0   : > { %1368 = vmatprep.subr.mxu1 %v1596_v1  ;;  %1326 = vmatpush3.msra.mxu0 %v454_v37 }
 0x1b1   : > { %1369 = vmatpush3.msra.mxu1 %v1897_v35  ;;  %1370 = vmatprep.mubr.msk.f32.mxu1 %vm1597_vm1, %v1596_v1 }
 0x1b2   : > { %1327 = vmatprep.subr.mxu0 %v1596_v1  ;;  %1371 = vmatmul.mubr.f32.vlgmr.msra.gmra.mxu1 %v1956_v62 }
 0x1b3   : > { %1328 = vmatpush3.msra.mxu0 %v461_v55  ;;  %1335 = vmatprep.mubr.msk.f32.mxu0 %vm1597_vm1, %v1596_v1 }
 0x1b4   : > { %1329 = vmatprep.subr.mxu0 %v1596_v1 }
 0x1b5   : > { %1330 = vmatpush3.msra.mxu0 %v468_v56 }
 0x1b6   : > { %1331 = vmatprep.subr.mxu0 %v1596_v1 }
 0x1b7   : > { %1332 = vmatpush3.msra.mxu0 %v475_v60 }
 0x1b8   : > { %1333 = vmatprep.subr.mxu0 %v1596_v1 }
 0x1b9   : > { %1334 = vmatpush3.msra.mxu0 %v482_v61 }
 0x1ba   : > { %1336 = vmatmul.mubr.f32.vlgmr.msra.gmra.mxu0 %v1956_v62 }
 0x230   : > { %v521_v5 = vpop.f32.mrf.mxu1 }
 0x232   : > { %v1232_v6 = vpop.f32.mrf.mxu1 }
 0x238   : > { %v370_v7 = vpop.f32.mrf.mxu0 }
 0x239   : > { %v371_v1 = vadd.f32 %v1056_v15, %v370_v7 }
 0x23a   : > { %v1197_v10 = vpop.f32.mrf.mxu0 }
 0x23b   : > { %v522_v17 = vadd.f32 %v521_v5, %v371_v1 }
 0x250   : > { %v714_v11 = vpop.f32.mrf.mxu1 }
 0x252   : > { %v1302_v12 = vpop.f32.mrf.mxu1 }
 0x259   : > { %v625_v13 = vpop.f32.mrf.mxu0 }
 0x25a   : > { %v626_v19 = vadd.f32 %v625_v13, %v522_v17 }
 0x25b   : > { %v1267_v14 = vpop.f32.mrf.mxu0 }
 0x25c   : > { %v715_v20 = vadd.f32 %v714_v11, %v626_v19 }
 0x272   : > { %v920_v16 = vpop.f32.mrf.mxu1 }
 0x274   : > { %v1372_v18 = vpop.f32.mrf.mxu1 }
 0x27a   : > { %v833_v24 = vpop.f32.mrf.mxu0 }
 0x27b   : > { %v834_v41 = vadd.f32 %v833_v24, %v715_v20 }
 0x27c   : > { %v1337_v43 = vpop.f32.mrf.mxu0 }
 0x27d   : > { %v921_v44 = vadd.f32 %v920_v16, %v834_v41 }
 0x27f   : > { %924 = vst [vmem:[%s232_s27] sm:$0xff] %v921_v44 }
 0x280   : > { %1519 = shalt.err (!%p1516_p5)
}
 0x281   : > { %s1520_s25 = scalar_lea.hbm %s938_s21, 128  ;;  %s1524_s18 = scalar_lea.hbm %s2165_s3, 256 }
 0x282   : > { %p1521_p7 = scmp.ne.s32.totalorder %s938_s21, %s1520_s25  ;;  %p1525_p9 = scmp.lt.s32.totalorder %s938_s21, %s2165_s3 }
 0x283   : > { %p1526_p11 = scmp.lt.s32.totalorder %s1524_s18, %s1520_s25 }
 0x284   : > { %p1522_p6 = pnand %p1521_p7, %p1706_p13 }
 0x285   : > { %p1527_p12 = por %p1526_p11, %p1525_p9 }
 0x286   : > { %p1523_p4 = pneg %p1522_p6 }
 0x288   : > { %p1528_p1 = pnand %p1527_p12, %p1523_p4 }
 0x28a   : > { %1531 = shalt.err (!%p1528_p1)
}
 0x28b   : > { %1379 = dma.vmem_to_hbm [thread:$0]  (%p1706_p13), %s941_s29, 128, %s938_s21, %s926_s5  }
 0x28c PF: > { %s952_s22 = sand.u32 1, %s1570_s12   ;;  %p2177_p8 = scmp.ne.s32.totalorder %s2170_s23, 0 }
 0x28d   : > { %p2178_p10 = scmp.ge.s32.totalorder %s1590_s17, 2  ;;  %s953_s24 = scalar_lea.sflag [#allocation5], %s952_s22 }
 0x28f   : > { %p1390_p0 = pnand %p2178_p10, %p2177_p8 }
 0x291   : > { %p1391_p2 = pneg %p1390_p0 }
 0x293   : > { %1565 = dma.done.wait (%p1391_p2), %s953_s24, 128  }
 0x294   : > { %1567 = vsyncadd (%p1391_p2), %s953_s24, 4294967168  ;;  %s20_s17 = sadd.s32 1, %s1590_s17   ;;  %s2179_s12 = smov %s1574_s13 }
 0x295   : > { %p17_p3 = scmp.ge.s32.totalorder %s20_s17, 4   ;;  %s2180_s13 = smov %s1578_s14 }
 0x296   : > { %s2181_s14 = smov %s1715_s19  ;;  %s2182_s15 = smov %s1586_s16 }
 0x297   : > { %s2183_s16 = smov %s2185_s28  ;;  %19 = sbr.rel (!%p17_p3) target bundleno = 7 (0x7), region = 89 }
 0x29c   :  { %958 = vsyncpa [#allocation4], 1 }
 0x29d   :  { %960 = vsyncpa [#allocation4 + $0x1], 1 }
 0x29e   :  { %961 = vsyncpa [#allocation7], 1 }
 0x29f   :  { %962 = vsyncpa [#allocation5], 1 }
 0x2a0   :  { %964 = vsyncpa [#allocation5 + $0x1], 1 }

</bundles_post_ra>
